<compile_context>
chip_gen: v7x
topology: tpu7x:2x2x1
jax: 0.10.0
libtpu: 0.0.40
codegen_flags: <defaults>
</compile_context>

<pallas_src>
import math

import jax
import jax.numpy as jnp
from jax.experimental import pallas as pl
from jax.experimental.pallas import tpu as pltpu

_LANE = 128
_MAX_WIDTH = 16384                    # lane-dim cap (elements)
_TILE_CAP_BYTES = 2 * 1024 * 1024     # per-tile cap: 2 MiB -> <= 8 MiB live with
                                      # double-buffered in+out on every generation.


def _copy_kernel(x_ref, o_ref):
    # Identity pass-through of the current (block_rows, width) tile.
    o_ref[...] = x_ref[...]


def _resolve_size(size, total):
    """torch.Tensor.view semantics with at most one -1 entry."""
    size = tuple(int(s) for s in size)
    if -1 in size:
        idx = size.index(-1)
        known = 1
        for j, s in enumerate(size):
            if j != idx:
                known *= s
        assert known > 0 and total % known == 0, "View size is not compatible with input"
        size = size[:idx] + (total // known,) + size[idx + 1:]
    assert math.prod(size) == total, "View size is not compatible with input"
    return size


def _choose_geometry(total, itemsize):
    """Pick (rows, width, block_rows) for a padding-free, lane-dense copy.

    width is a multiple of 128 that divides `total` exactly (no pad, no tail
    slice).  block_rows is either a dtype-native multiple of the sublane tile
    that divides `rows`, or the full row extent (full-extent blocks bypass the
    (8, 128) divisibility rule).  Returns None if no such tiling exists; the
    caller then falls back to a metadata-only reshape.
    """
    min_sub = max(8, 32 // itemsize)          # 8 for >=4B, 16 for bf16, 32 for int8/fp8
    max_w = min(_MAX_WIDTH, (total // _LANE) * _LANE)
    w = max_w
    while w >= _LANE:
        if total % w == 0:
            rows = total // w
            cap_rows = max(1, _TILE_CAP_BYTES // (w * itemsize))
            if rows <= cap_rows:
                return rows, w, rows          # single (or few) full-extent block(s)
            d = (cap_rows // min_sub) * min_sub
            while d >= min_sub:
                if rows % d == 0:
                    return rows, w, d
                d -= min_sub
        w -= _LANE
    return None


def pallas_view(x, size):
    """Equivalent of torch `tensor.view(size)`; data pass-through runs in Pallas."""
    total = x.size
    out_size = _resolve_size(size, total)

    itemsize = jnp.dtype(x.dtype).itemsize
    geom = None if total == 0 else _choose_geometry(total, itemsize)
    if geom is None:
        # TODO(synk): tiny / non-128-divisible element counts get a pure
        # metadata reshape (which is what torch .view is anyway).
        return jnp.reshape(x, out_size)

    rows, width, block_rows = geom
    flat2d = jnp.reshape(x, (rows, width))        # metadata-only (contiguous input)

    out2d = pl.pallas_call(
        _copy_kernel,
        out_shape=jax.ShapeDtypeStruct((rows, width), x.dtype),
        grid_spec=pltpu.PrefetchScalarGridSpec(
            num_scalar_prefetch=0,
            grid=(rows // block_rows,),           # exact by construction
            in_specs=[pl.BlockSpec((block_rows, width), lambda i: (i, 0))],
            out_specs=pl.BlockSpec((block_rows, width), lambda i: (i, 0)),
        ),
        compiler_params=pltpu.CompilerParams(
            dimension_semantics=("parallel",),    # lets both v7x TCs drive DMA
            vmem_limit_bytes=32 << 20,
        ),
        cost_estimate=pl.CostEstimate(
            flops=0,
            transcendentals=0,
            bytes_accessed=2 * total * itemsize,
        ),
    )(flat2d)

    return jnp.reshape(out2d, out_size)           # metadata-only


class View:
    """JAX/Pallas counterpart of the torch View module (no parameters)."""

    def __init__(self, size):
        self.size = size

    def __call__(self, tensor):
        return pallas_view(tensor, self.size)


if __name__ == "__main__":
    key = jax.random.PRNGKey(0)

    # NCHW input, as a betavae encoder would produce before View((-1, C*H*W)).
    x = jax.random.normal(key, (2, 4, 16, 16), dtype=jnp.float32)
    view = View((-1, 4 * 16 * 16))
    y = jax.block_until_ready(view(x))
    ref = jnp.reshape(x, (-1, 4 * 16 * 16))
    assert y.shape == (2, 1024), y.shape
    assert y.dtype == x.dtype
    assert bool(jnp.array_equal(y, ref))

    # Larger case exercising the multi-block grid path (rows > block_rows).
    x2 = jax.random.normal(key, (8, 128, 32, 32), dtype=jnp.float32)
    v2 = View((8, -1))
    y2 = jax.block_until_ready(v2(x2))
    assert bool(jnp.array_equal(y2, jnp.reshape(x2, (8, -1))))

    # Odd-sized input hits the metadata-only fallback path.
    x3 = jax.random.normal(key, (3, 5, 7), dtype=jnp.float32)
    y3 = jax.block_until_ready(View((-1,))(x3))
    assert bool(jnp.array_equal(y3, jnp.reshape(x3, (-1,))))

    print("KERNEL_OK")
</pallas_src>

<mosaic_0001>
module attributes {stable_mosaic.version = 11 : i64} {
  func.func @_copy_kernel(%arg0: i32, %arg1: memref<1x2048xf32, #tpu.memory_space<vmem>>, %arg2: memref<1x2048xf32, #tpu.memory_space<vmem>>) attributes {dimension_semantics = [#tpu.dimension_semantics<parallel>], iteration_bounds = array<i64: 1>, scalar_prefetch = 0 : i64, scratch_operands = 0 : i64, tpu.core_type = #tpu.core_type<tc>, window_params = [{transform_indices = @transform_0, window_bounds = array<i64: 1, 2048>}, {transform_indices = @transform_1, window_bounds = array<i64: 1, 2048>}]} {
    %c0 = arith.constant 0 : index
    %c0_0 = arith.constant 0 : index
    %0 = vector.load %arg1[%c0, %c0_0] : memref<1x2048xf32, #tpu.memory_space<vmem>>, vector<1x2048xf32>
    %c0_1 = arith.constant 0 : index
    %c0_2 = arith.constant 0 : index
    %1 = vector.load %arg2[%c0_1, %c0_2] : memref<1x2048xf32, #tpu.memory_space<vmem>>, vector<1x2048xf32>
    tpu.vector_store %arg2[%c0_1, %c0_2], %0 {strides = array<i32>} : memref<1x2048xf32, #tpu.memory_space<vmem>>, vector<1x2048xf32>,
    return
  }
  func.func @transform_0(%arg0: i32) -> (i32, i32) {
    %c0_i32 = arith.constant 0 : i32
    %c0_i32_0 = arith.constant 0 : i32
    return %arg0, %c0_i32 : i32, i32
  }
  func.func @transform_1(%arg0: i32) -> (i32, i32) {
    %c0_i32 = arith.constant 0 : i32
    %c0_i32_0 = arith.constant 0 : i32
    return %arg0, %c0_i32 : i32, i32
  }
}

</mosaic_0001>

<bundles_post_ra>
// kernel: tpu_custom_call.1
= control target key start
LH: loop header
LB: loop body
LE: loop exit
PB: predicated region body
PF: predicated region fallthrough
CT: control target
= control target key end

     0   :  { %6 = vsyncpa [#allocation3], 0  ;;  %s126_s0 = inlined_call_operand.hbm [shape: f32[1,2048], index: 0, kind: input, shape index: {}]   ;;  %s127_s1 = inlined_call_operand.hbm [shape: f32[1,2048], index: 1, kind: output, shape index: {}]  }
   0x1   :  { %7 = vsyncpa [#allocation4], 0  ;;  %s90_s6 = smov [#allocation2]   ;;  %s42_s10 = scalar_lea.hbm %s126_s0, 256 }
   0x2   :  { %s14_s7 = sshll.u32 %s90_s6, 4  ;;  %p43_p0 = scmp.ne.s32.totalorder %s126_s0, %s42_s10  ;;  %s15_s7 = int_to_ptr.vmem [resolvable:$true] %s14_s7 }
   0x3   :  { %p46_p1 = scmp.lt.u32.totalorder %s42_s10, %s126_s0 }
   0x5   :  { %p48_p2 = pnand %p46_p1, %p43_p0 }
   0x7   :  { %51 = shalt.err (!%p48_p2)
}
   0x8   :  { %s52_s15 = scalar_lea.vmem %s15_s7, 256  ;;  %p57_p4 = scmp.lt.s32.totalorder %s15_s7, %s15_s7 }
   0x9   :  { %p53_p3 = scmp.ne.s32.totalorder %s15_s7, %s52_s15  ;;  %p58_p5 = scmp.lt.s32.totalorder %s52_s15, %s52_s15 }
   0xb   :  { %p59_p6 = por %p58_p5, %p57_p4 }
   0xd   :  { %p60_p7 = pnand %p59_p6, %p53_p3 }
   0xf   :  { %63 = shalt.err (!%p60_p7)
}
  0x10   :  { %17 = dma.hbm_to_vmem [thread:$0]  %s126_s0, 256, %s15_s7, [#allocation3]  }
  0x11   :  { %86 = dma.done.wait [#allocation3], 256  }
  0x12   :  { %87 = vsyncadd [#allocation3], 4294967040  ;;  %s91_s18 = smov [#allocation5]   ;;  %v21_v0 = vld [vmem:[#allocation2] sm:$0xff]  ;;  %v22_v1 = vld [vmem:[#allocation2 + $0x8] sm:$0xff] }
  0x13   :  { %s31_s19 = sshll.u32 %s91_s18, 4  ;;  %23 = vst [vmem:[#allocation5] sm:$0xff] %v21_v0  ;;  %24 = vst [vmem:[#allocation5 + $0x8] sm:$0xff] %v22_v1  ;;  %s32_s19 = int_to_ptr.vmem [resolvable:$true] %s31_s19 }
  0x14   :  { %s64_s20 = scalar_lea.vmem %s32_s19, 256  ;;  %p69_p9 = scmp.lt.s32.totalorder %s32_s19, %s32_s19 }
  0x15   :  { %p65_p8 = scmp.ne.s32.totalorder %s32_s19, %s64_s20  ;;  %p70_p10 = scmp.lt.s32.totalorder %s64_s20, %s64_s20 }
  0x17   :  { %p71_p11 = por %p70_p10, %p69_p9 }
  0x19   :  { %p72_p12 = pnand %p71_p11, %p65_p8 }
  0x1b   :  { %75 = shalt.err (!%p72_p12)
}
  0x1c   :  { %s76_s0 = scalar_lea.hbm %s127_s1, 256 }
  0x1d   :  { %p77_p13 = scmp.ne.s32.totalorder %s127_s1, %s76_s0  ;;  %p80_p0 = scmp.lt.u32.totalorder %s76_s0, %s127_s1 }
  0x1f   :  { %p82_p1 = pnand %p80_p0, %p77_p13 }
  0x21   :  { %85 = shalt.err (!%p82_p1)
}
  0x22   :  { %34 = dma.vmem_to_hbm [thread:$0]  %s32_s19, 256, %s127_s1, [#allocation4]  }
  0x23   :  { %88 = dma.done.wait [#allocation4], 256  }
  0x24   :  { %89 = vsyncadd [#allocation4], 4294967040 }
  0x25   :  { %38 = vsyncpa [#allocation3], 1 }
  0x26   :  { %39 = vsyncpa [#allocation4], 1 }

</bundles_post_ra>
